<compile_context>
chip_gen: v6e
topology: v6e:2x2x1
jax: 0.10.0
libtpu: 0.0.40
codegen_flags: <defaults>
</compile_context>

<pallas_src>
import numpy as np

import jax
import jax.numpy as jnp
from jax.experimental import pallas as pl
from jax.experimental.pallas import tpu as pltpu

WIN = 7          # SSIMLoss win_size
K1 = 0.01
K2 = 0.03

_FOOT_MAPS = 56  # conservative count of live f32 map copies per packed row


# ----------------------------- small helpers --------------------------------
def _largest_divisor_leq(n, cap):
    cap = max(1, min(n, cap))
    d = 1
    for t in range(1, cap + 1):
        if n % t == 0:
            d = t
    return d


def _vmem_capacity_bytes():
    try:
        return int(pltpu.get_tpu_info().vmem_capacity_bytes)
    except Exception:
        return 64 * 1024 * 1024          # v7x-safe fallback


def _pick_tb(bp, h, gw, budget):
    """Packed rows per grid step: biggest divisor of bp that fits the VMEM
    budget, capped so the grid keeps >= 2 steps (v7x megacore) when possible."""
    per_row = 4 * h * gw * _FOOT_MAPS
    if per_row > budget:
        # TODO(synk): row-strip tiling with a 6-row halo so one image group's
        # intermediate maps never exceed the per-generation VMEM budget.
        raise NotImplementedError(
            f"ssim_l1_pallas: one (H={h}, G*W={gw}) image group needs "
            f"~{per_row >> 20} MiB of VMEM intermediates "
            f"(budget {budget >> 20} MiB); row-strip tiling not implemented.")
    cap = min(bp, max(1, budget // per_row))
    if bp >= 2:
        cap = min(cap, max(1, bp // 2))   # keep n_blk >= 2 for v7x's 2 TCs
    return _largest_divisor_leq(bp, cap)


def _band_matrix(g, w, ow):
    """(g*w, g*ow) block-diagonal banded matrix: the 7-tap column box filter
    (with the 1/49 window weight folded in) as a single lane-axis MXU matmul."""
    band = np.zeros((g * w, g * ow), np.float32)
    inv = 1.0 / (WIN * WIN)
    for s in range(g):
        for j in range(ow):
            band[s * w + j: s * w + j + WIN, s * ow + j] = inv
    return jnp.asarray(band)


# ------------------------------- the kernel ---------------------------------
def _make_kernel(W, OW, G):
    """Kernel for blocks of TB packed rows; each packed row carries G images
    of width W side by side along the lane axis."""

    def kernel(x_ref, y_ref, band_ref, out_ref):
        x = x_ref[...].astype(jnp.float32)        # (TB, H, G*W)
        y = y_ref[...].astype(jnp.float32)
        TB, H, GW = x.shape
        OH = H - WIN + 1
        GOW = G * OW

        # ---- per-image dynamic range -> per-lane C1 / C2 maps --------------
        # Sublane reduce on the big tensors once, then tiny per-segment work.
        xmx = jnp.max(x, axis=1, keepdims=True)   # (TB, 1, GW)
        xmn = jnp.min(x, axis=1, keepdims=True)
        ymx = jnp.max(y, axis=1, keepdims=True)
        ymn = jnp.min(y, axis=1, keepdims=True)

        lane = jax.lax.broadcasted_iota(jnp.int32, (1, 1, GOW), 2)
        c1m = jnp.zeros((TB, 1, GOW), jnp.float32)
        c2m = jnp.zeros((TB, 1, GOW), jnp.float32)
        for g in range(G):                        # G <= 8, tiny tensors
            sl = slice(g * W, (g + 1) * W)
            rx = (jnp.max(xmx[:, :, sl], axis=2, keepdims=True)
                  - jnp.min(xmn[:, :, sl], axis=2, keepdims=True))
            ry = (jnp.max(ymx[:, :, sl], axis=2, keepdims=True)
                  - jnp.min(ymn[:, :, sl], axis=2, keepdims=True))
            rng = jnp.maximum(rx, ry)             # (TB, 1, 1)
            in_seg = (lane >= g * OW) & (lane < (g + 1) * OW)
            c1m = jnp.where(in_seg, (K1 * rng) ** 2, c1m)
            c2m = jnp.where(in_seg, (K2 * rng) ** 2, c2m)

        # ---- stacked separable 7x7 mean filter ------------------------------
        # All five maps ride one instruction stream.  Column pass = one MXU
        # matmul against the banded (1/49) matrix; row pass = 6 sublane
        # shift-adds on the already column-reduced stack.
        m = jnp.concatenate([x, y, x * x, y * y, x * y], axis=0)  # (5TB,H,GW)
        col = jnp.dot(m.reshape(5 * TB * H, GW), band_ref[...],
                      preferred_element_type=jnp.float32)
        col = col.reshape(5 * TB, H, GOW)
        u = col[:, 0:OH, :]
        for dy in range(1, WIN):                  # sublane shifts only
            u = u + col[:, dy:dy + OH, :]         # (5TB, OH, GOW) windowed means

        ux, uy = u[0 * TB:1 * TB], u[1 * TB:2 * TB]
        uxx, uyy, uxy = u[2 * TB:3 * TB], u[3 * TB:4 * TB], u[4 * TB:5 * TB]

        # ---- SSIM map with cov_norm folded into scalar constants ------------
        cn = jnp.float32(WIN * WIN / (WIN * WIN - 1.0))   # 49/48
        P = ux * uy
        Q = ux * ux + uy * uy
        A1 = 2.0 * P + c1m
        A2 = (2.0 * cn) * (uxy - P) + c2m
        B1 = Q + c1m
        B2 = cn * (uxx + uyy - Q) + c2m
        d = B1 * B2
        inv = pl.reciprocal(d, approx=True)       # EUP
        inv = inv * (2.0 - d * inv)               # one Newton step (~f32)
        s = (A1 * A2) * inv                       # (TB, OH, GOW)

        # ---- block partial sums -> one full (8,128) output tile -------------
        def _tot(a):
            a = jnp.sum(a, axis=2, keepdims=True)
            a = jnp.sum(a, axis=1, keepdims=True)
            return jnp.sum(a, axis=0, keepdims=True)          # (1, 1, 1)

        s_sum = _tot(s)
        l_sum = _tot(jnp.abs(x - y))
        rows = jax.lax.broadcasted_iota(jnp.int32, out_ref.shape, 1)
        out_ref[...] = (jnp.where(rows == 0, s_sum, 0.0)
                        + jnp.where(rows == 1, l_sum, 0.0))

    return kernel


# ------------------------------- the wrapper ---------------------------------
def ssim_l1_pallas(X, Y, gamma):
    """SSIM_L1.forward(X, Y) for NCHW inputs (float32 or bf16)."""
    B, C, H, W = X.shape
    assert H >= WIN and W >= WIN, "image smaller than SSIM window"
    BC = B * C
    OH, OW = H - WIN + 1, W - WIN + 1

    # ---- lane packing: G images side by side along the lane axis ------------
    gmax = max(1, 128 // W) if W < 128 else 1
    G = _largest_divisor_leq(BC, gmax)
    if BC // G < 2:        # prefer >= 2 packed groups so the grid has >= 2 steps
        G = _largest_divisor_leq(BC, max(1, min(gmax, BC // 2)))
    BP, GW, GOW = BC // G, G * W, G * OW

    x3 = X.reshape(BC, H, W)
    y3 = Y.reshape(BC, H, W)
    if G > 1:
        x3 = x3.reshape(BP, G, H, W).transpose(0, 2, 1, 3).reshape(BP, H, GW)
        y3 = y3.reshape(BP, G, H, W).transpose(0, 2, 1, 3).reshape(BP, H, GW)
    band = _band_matrix(G, W, OW)

    # ---- generation-aware VMEM budget / block size ---------------------------
    vmem_cap = _vmem_capacity_bytes()             # 64 MiB v7x, 128 MiB v5e/v6e
    vmem_limit = min((vmem_cap * 3) // 4, 96 * 1024 * 1024)
    TB = _pick_tb(BP, H, GW, (vmem_limit * 4) // 5)
    n_blk = BP // TB

    out = pl.pallas_call(
        _make_kernel(W, OW, G),
        out_shape=jax.ShapeDtypeStruct((n_blk, 8, 128), jnp.float32),
        grid_spec=pltpu.PrefetchScalarGridSpec(
            num_scalar_prefetch=0,
            grid=(n_blk,),
            in_specs=[pl.BlockSpec((TB, H, GW), lambda i: (i, 0, 0)),
                      pl.BlockSpec((TB, H, GW), lambda i: (i, 0, 0)),
                      pl.BlockSpec((GW, GOW), lambda i: (0, 0))],
            out_specs=pl.BlockSpec((1, 8, 128), lambda i: (i, 0, 0)),
        ),
        compiler_params=pltpu.CompilerParams(
            dimension_semantics=("parallel",),
            vmem_limit_bytes=vmem_limit),
    )(x3, y3, band)

    ssim_sum = jnp.sum(out[:, 0, 0])
    l1_sum = jnp.sum(out[:, 1, 0])
    ssim_loss = 1.0 - ssim_sum / jnp.float32(BC * OH * OW)
    l1_loss = l1_sum / jnp.float32(BC * H * W)
    return ssim_loss * jnp.float32(gamma) + l1_loss


# ---------------- pure-JAX reference (mirrors the PyTorch code) --------------
def _ssim_l1_reference(X, Y, gamma, win_size=WIN, k1=K1, k2=K2):
    w = jnp.ones((1, 1, win_size, win_size), jnp.float32) / (win_size ** 2)
    NP = win_size ** 2
    cov_norm = NP / (NP - 1)

    def conv(a):
        return jax.lax.conv_general_dilated(
            a, w, (1, 1), 'VALID',
            dimension_numbers=('NCHW', 'OIHW', 'NCHW'),
            precision=jax.lax.Precision.HIGHEST)

    S = []
    for c in range(X.shape[1]):
        xc = X[:, c:c + 1]
        yc = Y[:, c:c + 1]
        rng = jnp.maximum(yc.max(axis=(1, 2, 3)) - yc.min(axis=(1, 2, 3)),
                          xc.max(axis=(1, 2, 3)) - xc.min(axis=(1, 2, 3)))
        C1 = ((k1 * rng) ** 2)[:, None, None, None]
        C2 = ((k2 * rng) ** 2)[:, None, None, None]
        ux, uy = conv(xc), conv(yc)
        uxx, uyy, uxy = conv(xc * xc), conv(yc * yc), conv(xc * yc)
        vx = cov_norm * (uxx - ux * ux)
        vy = cov_norm * (uyy - uy * uy)
        vxy = cov_norm * (uxy - ux * uy)
        A1, A2 = 2 * ux * uy + C1, 2 * vxy + C2
        B1, B2 = ux ** 2 + uy ** 2 + C1, vx + vy + C2
        S.append(A1 * A2 / (B1 * B2))
    ssim_loss = 1.0 - jnp.concatenate(S, axis=0).mean()
    l1_loss = jnp.mean(jnp.abs(X - Y))
    return ssim_loss * gamma + l1_loss


if __name__ == "__main__":
    key = jax.random.PRNGKey(0)
    kx, kn = jax.random.split(key)
    B, C, H, W = 2, 4, 16, 16
    gamma = 0.84  # deterministic in-script choice for SSIM_L1(gamma)

    X = jax.random.normal(kx, (B, C, H, W), jnp.float32)
    Y = X + 0.1 * jax.random.normal(kn, (B, C, H, W), jnp.float32)

    out = jax.block_until_ready(ssim_l1_pallas(X, Y, gamma))
    ref = jax.block_until_ready(_ssim_l1_reference(X, Y, gamma))

    assert jnp.isfinite(out), "kernel produced non-finite loss"
    assert abs(float(out) - float(ref)) < 1e-3, (float(out), float(ref))
    print("KERNEL_OK")
</pallas_src>

<mosaic_0001>
module attributes {stable_mosaic.version = 11 : i64} {
  func.func @kernel(%arg0: i32, %arg1: memref<1x16x64xf32, #tpu.memory_space<vmem>>, %arg2: memref<1x16x64xf32, #tpu.memory_space<vmem>>, %arg3: memref<64x40xf32, #tpu.memory_space<vmem>>, %arg4: memref<1x8x128xf32, #tpu.memory_space<vmem>>) attributes {dimension_semantics = [#tpu.dimension_semantics<parallel>], iteration_bounds = array<i64: 2>, scalar_prefetch = 0 : i64, scratch_operands = 0 : i64, tpu.core_type = #tpu.core_type<tc>, window_params = [{transform_indices = @transform_0, window_bounds = array<i64: 1, 16, 64>}, {transform_indices = @transform_1, window_bounds = array<i64: 1, 16, 64>}, {pipeline_mode = #tpu.pipeline_mode<synchronous>, transform_indices = @transform_2, window_bounds = array<i64: 64, 40>}, {transform_indices = @transform_3, window_bounds = array<i64: 1, 8, 128>}]} {
    %c0 = arith.constant 0 : index
    %c0_0 = arith.constant 0 : index
    %c0_1 = arith.constant 0 : index
    %0 = vector.load %arg1[%c0, %c0_0, %c0_1] : memref<1x16x64xf32, #tpu.memory_space<vmem>>, vector<1x16x64xf32>
    %c0_2 = arith.constant 0 : index
    %c0_3 = arith.constant 0 : index
    %c0_4 = arith.constant 0 : index
    %1 = vector.load %arg2[%c0_2, %c0_3, %c0_4] : memref<1x16x64xf32, #tpu.memory_space<vmem>>, vector<1x16x64xf32>
    %cst = arith.constant dense<0xFF800000> : vector<1x64xf32>
    %2 = vector.multi_reduction <maximumf>, %0, %cst [1] : vector<1x16x64xf32> to vector<1x64xf32>
    %3 = vector.shape_cast %2 : vector<1x64xf32> to vector<1x1x64xf32>
    %cst_5 = arith.constant dense<0x7F800000> : vector<1x64xf32>
    %4 = vector.multi_reduction <minimumf>, %0, %cst_5 [1] : vector<1x16x64xf32> to vector<1x64xf32>
    %5 = vector.shape_cast %4 : vector<1x64xf32> to vector<1x1x64xf32>
    %cst_6 = arith.constant dense<0xFF800000> : vector<1x64xf32>
    %6 = vector.multi_reduction <maximumf>, %1, %cst_6 [1] : vector<1x16x64xf32> to vector<1x64xf32>
    %7 = vector.shape_cast %6 : vector<1x64xf32> to vector<1x1x64xf32>
    %cst_7 = arith.constant dense<0x7F800000> : vector<1x64xf32>
    %8 = vector.multi_reduction <minimumf>, %1, %cst_7 [1] : vector<1x16x64xf32> to vector<1x64xf32>
    %9 = vector.shape_cast %8 : vector<1x64xf32> to vector<1x1x64xf32>
    %10 = tpu.iota {dimensions = array<i32: 2>} : vector<1x1x40xi32>
    %cst_8 = arith.constant 0.000000e+00 : f32
    %11 = vector.broadcast %cst_8 : f32 to vector<1x1x40xf32>
    %cst_9 = arith.constant 0.000000e+00 : f32
    %12 = vector.broadcast %cst_9 : f32 to vector<1x1x40xf32>
    %13 = vector.extract_strided_slice %3 {offsets = [0, 0, 0], sizes = [1, 1, 16], strides = [1, 1, 1]} : vector<1x1x64xf32> to vector<1x1x16xf32>
    %cst_10 = arith.constant dense<0xFF800000> : vector<1x1xf32>
    %14 = vector.multi_reduction <maximumf>, %13, %cst_10 [2] : vector<1x1x16xf32> to vector<1x1xf32>
    %15 = vector.shape_cast %14 : vector<1x1xf32> to vector<1x1x1xf32>
    %16 = vector.extract_strided_slice %5 {offsets = [0, 0, 0], sizes = [1, 1, 16], strides = [1, 1, 1]} : vector<1x1x64xf32> to vector<1x1x16xf32>
    %cst_11 = arith.constant dense<0x7F800000> : vector<1x1xf32>
    %17 = vector.multi_reduction <minimumf>, %16, %cst_11 [2] : vector<1x1x16xf32> to vector<1x1xf32>
    %18 = vector.shape_cast %17 : vector<1x1xf32> to vector<1x1x1xf32>
    %19 = arith.subf %15, %18 : vector<1x1x1xf32>
    %20 = vector.extract_strided_slice %7 {offsets = [0, 0, 0], sizes = [1, 1, 16], strides = [1, 1, 1]} : vector<1x1x64xf32> to vector<1x1x16xf32>
    %cst_12 = arith.constant dense<0xFF800000> : vector<1x1xf32>
    %21 = vector.multi_reduction <maximumf>, %20, %cst_12 [2] : vector<1x1x16xf32> to vector<1x1xf32>
    %22 = vector.shape_cast %21 : vector<1x1xf32> to vector<1x1x1xf32>
    %23 = vector.extract_strided_slice %9 {offsets = [0, 0, 0], sizes = [1, 1, 16], strides = [1, 1, 1]} : vector<1x1x64xf32> to vector<1x1x16xf32>
    %cst_13 = arith.constant dense<0x7F800000> : vector<1x1xf32>
    %24 = vector.multi_reduction <minimumf>, %23, %cst_13 [2] : vector<1x1x16xf32> to vector<1x1xf32>
    %25 = vector.shape_cast %24 : vector<1x1xf32> to vector<1x1x1xf32>
    %26 = arith.subf %22, %25 : vector<1x1x1xf32>
    %27 = arith.maximumf %19, %26 : vector<1x1x1xf32>
    %c0_i32 = arith.constant 0 : i32
    %28 = vector.broadcast %c0_i32 : i32 to vector<1x1x40xi32>
    %29 = arith.cmpi sge, %10, %28 : vector<1x1x40xi32>
    %c10_i32 = arith.constant 10 : i32
    %30 = vector.broadcast %c10_i32 : i32 to vector<1x1x40xi32>
    %31 = arith.cmpi slt, %10, %30 : vector<1x1x40xi32>
    %32 = arith.andi %29, %31 : vector<1x1x40xi1>
    %cst_14 = arith.constant 0.00999999977 : f32
    %33 = vector.broadcast %cst_14 : f32 to vector<1x1x1xf32>
    %34 = arith.mulf %33, %27 : vector<1x1x1xf32>
    %35 = arith.mulf %34, %34 : vector<1x1x1xf32>
    %36 = vector.shape_cast %35 : vector<1x1x1xf32> to vector<1x1x1xf32>
    %37 = vector.broadcast %36 : vector<1x1x1xf32> to vector<1x1x40xf32>
    %38 = arith.select %32, %37, %11 : vector<1x1x40xi1>, vector<1x1x40xf32>
    %cst_15 = arith.constant 3.000000e-02 : f32
    %39 = vector.broadcast %cst_15 : f32 to vector<1x1x1xf32>
    %40 = arith.mulf %39, %27 : vector<1x1x1xf32>
    %41 = arith.mulf %40, %40 : vector<1x1x1xf32>
    %42 = vector.shape_cast %41 : vector<1x1x1xf32> to vector<1x1x1xf32>
    %43 = vector.broadcast %42 : vector<1x1x1xf32> to vector<1x1x40xf32>
    %44 = arith.select %32, %43, %12 : vector<1x1x40xi1>, vector<1x1x40xf32>
    %45 = vector.extract_strided_slice %3 {offsets = [0, 0, 16], sizes = [1, 1, 16], strides = [1, 1, 1]} : vector<1x1x64xf32> to vector<1x1x16xf32>
    %cst_16 = arith.constant dense<0xFF800000> : vector<1x1xf32>
    %46 = vector.multi_reduction <maximumf>, %45, %cst_16 [2] : vector<1x1x16xf32> to vector<1x1xf32>
    %47 = vector.shape_cast %46 : vector<1x1xf32> to vector<1x1x1xf32>
    %48 = vector.extract_strided_slice %5 {offsets = [0, 0, 16], sizes = [1, 1, 16], strides = [1, 1, 1]} : vector<1x1x64xf32> to vector<1x1x16xf32>
    %cst_17 = arith.constant dense<0x7F800000> : vector<1x1xf32>
    %49 = vector.multi_reduction <minimumf>, %48, %cst_17 [2] : vector<1x1x16xf32> to vector<1x1xf32>
    %50 = vector.shape_cast %49 : vector<1x1xf32> to vector<1x1x1xf32>
    %51 = arith.subf %47, %50 : vector<1x1x1xf32>
    %52 = vector.extract_strided_slice %7 {offsets = [0, 0, 16], sizes = [1, 1, 16], strides = [1, 1, 1]} : vector<1x1x64xf32> to vector<1x1x16xf32>
    %cst_18 = arith.constant dense<0xFF800000> : vector<1x1xf32>
    %53 = vector.multi_reduction <maximumf>, %52, %cst_18 [2] : vector<1x1x16xf32> to vector<1x1xf32>
    %54 = vector.shape_cast %53 : vector<1x1xf32> to vector<1x1x1xf32>
    %55 = vector.extract_strided_slice %9 {offsets = [0, 0, 16], sizes = [1, 1, 16], strides = [1, 1, 1]} : vector<1x1x64xf32> to vector<1x1x16xf32>
    %cst_19 = arith.constant dense<0x7F800000> : vector<1x1xf32>
    %56 = vector.multi_reduction <minimumf>, %55, %cst_19 [2] : vector<1x1x16xf32> to vector<1x1xf32>
    %57 = vector.shape_cast %56 : vector<1x1xf32> to vector<1x1x1xf32>
    %58 = arith.subf %54, %57 : vector<1x1x1xf32>
    %59 = arith.maximumf %51, %58 : vector<1x1x1xf32>
    %c10_i32_20 = arith.constant 10 : i32
    %60 = vector.broadcast %c10_i32_20 : i32 to vector<1x1x40xi32>
    %61 = arith.cmpi sge, %10, %60 : vector<1x1x40xi32>
    %c20_i32 = arith.constant 20 : i32
    %62 = vector.broadcast %c20_i32 : i32 to vector<1x1x40xi32>
    %63 = arith.cmpi slt, %10, %62 : vector<1x1x40xi32>
    %64 = arith.andi %61, %63 : vector<1x1x40xi1>
    %cst_21 = arith.constant 0.00999999977 : f32
    %65 = vector.broadcast %cst_21 : f32 to vector<1x1x1xf32>
    %66 = arith.mulf %65, %59 : vector<1x1x1xf32>
    %67 = arith.mulf %66, %66 : vector<1x1x1xf32>
    %68 = vector.shape_cast %67 : vector<1x1x1xf32> to vector<1x1x1xf32>
    %69 = vector.broadcast %68 : vector<1x1x1xf32> to vector<1x1x40xf32>
    %70 = arith.select %64, %69, %38 : vector<1x1x40xi1>, vector<1x1x40xf32>
    %cst_22 = arith.constant 3.000000e-02 : f32
    %71 = vector.broadcast %cst_22 : f32 to vector<1x1x1xf32>
    %72 = arith.mulf %71, %59 : vector<1x1x1xf32>
    %73 = arith.mulf %72, %72 : vector<1x1x1xf32>
    %74 = vector.shape_cast %73 : vector<1x1x1xf32> to vector<1x1x1xf32>
    %75 = vector.broadcast %74 : vector<1x1x1xf32> to vector<1x1x40xf32>
    %76 = arith.select %64, %75, %44 : vector<1x1x40xi1>, vector<1x1x40xf32>
    %77 = vector.extract_strided_slice %3 {offsets = [0, 0, 32], sizes = [1, 1, 16], strides = [1, 1, 1]} : vector<1x1x64xf32> to vector<1x1x16xf32>
    %cst_23 = arith.constant dense<0xFF800000> : vector<1x1xf32>
    %78 = vector.multi_reduction <maximumf>, %77, %cst_23 [2] : vector<1x1x16xf32> to vector<1x1xf32>
    %79 = vector.shape_cast %78 : vector<1x1xf32> to vector<1x1x1xf32>
    %80 = vector.extract_strided_slice %5 {offsets = [0, 0, 32], sizes = [1, 1, 16], strides = [1, 1, 1]} : vector<1x1x64xf32> to vector<1x1x16xf32>
    %cst_24 = arith.constant dense<0x7F800000> : vector<1x1xf32>
    %81 = vector.multi_reduction <minimumf>, %80, %cst_24 [2] : vector<1x1x16xf32> to vector<1x1xf32>
    %82 = vector.shape_cast %81 : vector<1x1xf32> to vector<1x1x1xf32>
    %83 = arith.subf %79, %82 : vector<1x1x1xf32>
    %84 = vector.extract_strided_slice %7 {offsets = [0, 0, 32], sizes = [1, 1, 16], strides = [1, 1, 1]} : vector<1x1x64xf32> to vector<1x1x16xf32>
    %cst_25 = arith.constant dense<0xFF800000> : vector<1x1xf32>
    %85 = vector.multi_reduction <maximumf>, %84, %cst_25 [2] : vector<1x1x16xf32> to vector<1x1xf32>
    %86 = vector.shape_cast %85 : vector<1x1xf32> to vector<1x1x1xf32>
    %87 = vector.extract_strided_slice %9 {offsets = [0, 0, 32], sizes = [1, 1, 16], strides = [1, 1, 1]} : vector<1x1x64xf32> to vector<1x1x16xf32>
    %cst_26 = arith.constant dense<0x7F800000> : vector<1x1xf32>
    %88 = vector.multi_reduction <minimumf>, %87, %cst_26 [2] : vector<1x1x16xf32> to vector<1x1xf32>
    %89 = vector.shape_cast %88 : vector<1x1xf32> to vector<1x1x1xf32>
    %90 = arith.subf %86, %89 : vector<1x1x1xf32>
    %91 = arith.maximumf %83, %90 : vector<1x1x1xf32>
    %c20_i32_27 = arith.constant 20 : i32
    %92 = vector.broadcast %c20_i32_27 : i32 to vector<1x1x40xi32>
    %93 = arith.cmpi sge, %10, %92 : vector<1x1x40xi32>
    %c30_i32 = arith.constant 30 : i32
    %94 = vector.broadcast %c30_i32 : i32 to vector<1x1x40xi32>
    %95 = arith.cmpi slt, %10, %94 : vector<1x1x40xi32>
    %96 = arith.andi %93, %95 : vector<1x1x40xi1>
    %cst_28 = arith.constant 0.00999999977 : f32
    %97 = vector.broadcast %cst_28 : f32 to vector<1x1x1xf32>
    %98 = arith.mulf %97, %91 : vector<1x1x1xf32>
    %99 = arith.mulf %98, %98 : vector<1x1x1xf32>
    %100 = vector.shape_cast %99 : vector<1x1x1xf32> to vector<1x1x1xf32>
    %101 = vector.broadcast %100 : vector<1x1x1xf32> to vector<1x1x40xf32>
    %102 = arith.select %96, %101, %70 : vector<1x1x40xi1>, vector<1x1x40xf32>
    %cst_29 = arith.constant 3.000000e-02 : f32
    %103 = vector.broadcast %cst_29 : f32 to vector<1x1x1xf32>
    %104 = arith.mulf %103, %91 : vector<1x1x1xf32>
    %105 = arith.mulf %104, %104 : vector<1x1x1xf32>
    %106 = vector.shape_cast %105 : vector<1x1x1xf32> to vector<1x1x1xf32>
    %107 = vector.broadcast %106 : vector<1x1x1xf32> to vector<1x1x40xf32>
    %108 = arith.select %96, %107, %76 : vector<1x1x40xi1>, vector<1x1x40xf32>
    %109 = vector.extract_strided_slice %3 {offsets = [0, 0, 48], sizes = [1, 1, 16], strides = [1, 1, 1]} : vector<1x1x64xf32> to vector<1x1x16xf32>
    %cst_30 = arith.constant dense<0xFF800000> : vector<1x1xf32>
    %110 = vector.multi_reduction <maximumf>, %109, %cst_30 [2] : vector<1x1x16xf32> to vector<1x1xf32>
    %111 = vector.shape_cast %110 : vector<1x1xf32> to vector<1x1x1xf32>
    %112 = vector.extract_strided_slice %5 {offsets = [0, 0, 48], sizes = [1, 1, 16], strides = [1, 1, 1]} : vector<1x1x64xf32> to vector<1x1x16xf32>
    %cst_31 = arith.constant dense<0x7F800000> : vector<1x1xf32>
    %113 = vector.multi_reduction <minimumf>, %112, %cst_31 [2] : vector<1x1x16xf32> to vector<1x1xf32>
    %114 = vector.shape_cast %113 : vector<1x1xf32> to vector<1x1x1xf32>
    %115 = arith.subf %111, %114 : vector<1x1x1xf32>
    %116 = vector.extract_strided_slice %7 {offsets = [0, 0, 48], sizes = [1, 1, 16], strides = [1, 1, 1]} : vector<1x1x64xf32> to vector<1x1x16xf32>
    %cst_32 = arith.constant dense<0xFF800000> : vector<1x1xf32>
    %117 = vector.multi_reduction <maximumf>, %116, %cst_32 [2] : vector<1x1x16xf32> to vector<1x1xf32>
    %118 = vector.shape_cast %117 : vector<1x1xf32> to vector<1x1x1xf32>
    %119 = vector.extract_strided_slice %9 {offsets = [0, 0, 48], sizes = [1, 1, 16], strides = [1, 1, 1]} : vector<1x1x64xf32> to vector<1x1x16xf32>
    %cst_33 = arith.constant dense<0x7F800000> : vector<1x1xf32>
    %120 = vector.multi_reduction <minimumf>, %119, %cst_33 [2] : vector<1x1x16xf32> to vector<1x1xf32>
    %121 = vector.shape_cast %120 : vector<1x1xf32> to vector<1x1x1xf32>
    %122 = arith.subf %118, %121 : vector<1x1x1xf32>
    %123 = arith.maximumf %115, %122 : vector<1x1x1xf32>
    %c30_i32_34 = arith.constant 30 : i32
    %124 = vector.broadcast %c30_i32_34 : i32 to vector<1x1x40xi32>
    %125 = arith.cmpi sge, %10, %124 : vector<1x1x40xi32>
    %c40_i32 = arith.constant 40 : i32
    %126 = vector.broadcast %c40_i32 : i32 to vector<1x1x40xi32>
    %127 = arith.cmpi slt, %10, %126 : vector<1x1x40xi32>
    %128 = arith.andi %125, %127 : vector<1x1x40xi1>
    %cst_35 = arith.constant 0.00999999977 : f32
    %129 = vector.broadcast %cst_35 : f32 to vector<1x1x1xf32>
    %130 = arith.mulf %129, %123 : vector<1x1x1xf32>
    %131 = arith.mulf %130, %130 : vector<1x1x1xf32>
    %132 = vector.shape_cast %131 : vector<1x1x1xf32> to vector<1x1x1xf32>
    %133 = vector.broadcast %132 : vector<1x1x1xf32> to vector<1x1x40xf32>
    %134 = arith.select %128, %133, %102 : vector<1x1x40xi1>, vector<1x1x40xf32>
    %cst_36 = arith.constant 3.000000e-02 : f32
    %135 = vector.broadcast %cst_36 : f32 to vector<1x1x1xf32>
    %136 = arith.mulf %135, %123 : vector<1x1x1xf32>
    %137 = arith.mulf %136, %136 : vector<1x1x1xf32>
    %138 = vector.shape_cast %137 : vector<1x1x1xf32> to vector<1x1x1xf32>
    %139 = vector.broadcast %138 : vector<1x1x1xf32> to vector<1x1x40xf32>
    %140 = arith.select %128, %139, %108 : vector<1x1x40xi1>, vector<1x1x40xf32>
    %141 = arith.mulf %0, %0 : vector<1x16x64xf32>
    %142 = arith.mulf %1, %1 : vector<1x16x64xf32>
    %143 = arith.mulf %0, %1 : vector<1x16x64xf32>
    %144 = tpu.concatenate %0, %1, %141, %142, %143 in 0 : vector<1x16x64xf32>, vector<1x16x64xf32>, vector<1x16x64xf32>, vector<1x16x64xf32>, vector<1x16x64xf32> -> vector<5x16x64xf32>
    %145 = vector.shape_cast %144 : vector<5x16x64xf32> to vector<80x64xf32>
    %c0_37 = arith.constant 0 : index
    %c0_38 = arith.constant 0 : index
    %146 = vector.load %arg3[%c0_37, %c0_38] : memref<64x40xf32, #tpu.memory_space<vmem>>, vector<64x40xf32>
    %cst_39 = arith.constant dense<0.000000e+00> : vector<80x40xf32>
    %147 = tpu.matmul %145, %146, %cst_39 {dimension_numbers = #tpu.dot_dimension_numbers<[1], [0], [0], [1], [0, 0, 1, 1], [], []>} : vector<80x64xf32>, vector<64x40xf32>, vector<80x40xf32> -> vector<80x40xf32>
    %148 = vector.shape_cast %147 : vector<80x40xf32> to vector<5x16x40xf32>
    %149 = vector.extract_strided_slice %148 {offsets = [0, 0, 0], sizes = [5, 10, 40], strides = [1, 1, 1]} : vector<5x16x40xf32> to vector<5x10x40xf32>
    %150 = vector.extract_strided_slice %148 {offsets = [0, 1, 0], sizes = [5, 10, 40], strides = [1, 1, 1]} : vector<5x16x40xf32> to vector<5x10x40xf32>
    %151 = arith.addf %149, %150 : vector<5x10x40xf32>
    %152 = vector.extract_strided_slice %148 {offsets = [0, 2, 0], sizes = [5, 10, 40], strides = [1, 1, 1]} : vector<5x16x40xf32> to vector<5x10x40xf32>
    %153 = arith.addf %151, %152 : vector<5x10x40xf32>
    %154 = vector.extract_strided_slice %148 {offsets = [0, 3, 0], sizes = [5, 10, 40], strides = [1, 1, 1]} : vector<5x16x40xf32> to vector<5x10x40xf32>
    %155 = arith.addf %153, %154 : vector<5x10x40xf32>
    %156 = vector.extract_strided_slice %148 {offsets = [0, 4, 0], sizes = [5, 10, 40], strides = [1, 1, 1]} : vector<5x16x40xf32> to vector<5x10x40xf32>
    %157 = arith.addf %155, %156 : vector<5x10x40xf32>
    %158 = vector.extract_strided_slice %148 {offsets = [0, 5, 0], sizes = [5, 10, 40], strides = [1, 1, 1]} : vector<5x16x40xf32> to vector<5x10x40xf32>
    %159 = arith.addf %157, %158 : vector<5x10x40xf32>
    %160 = vector.extract_strided_slice %148 {offsets = [0, 6, 0], sizes = [5, 10, 40], strides = [1, 1, 1]} : vector<5x16x40xf32> to vector<5x10x40xf32>
    %161 = arith.addf %159, %160 : vector<5x10x40xf32>
    %162 = vector.extract_strided_slice %161 {offsets = [0, 0, 0], sizes = [1, 10, 40], strides = [1, 1, 1]} : vector<5x10x40xf32> to vector<1x10x40xf32>
    %163 = vector.extract_strided_slice %161 {offsets = [1, 0, 0], sizes = [1, 10, 40], strides = [1, 1, 1]} : vector<5x10x40xf32> to vector<1x10x40xf32>
    %164 = vector.extract_strided_slice %161 {offsets = [2, 0, 0], sizes = [1, 10, 40], strides = [1, 1, 1]} : vector<5x10x40xf32> to vector<1x10x40xf32>
    %165 = vector.extract_strided_slice %161 {offsets = [3, 0, 0], sizes = [1, 10, 40], strides = [1, 1, 1]} : vector<5x10x40xf32> to vector<1x10x40xf32>
    %166 = vector.extract_strided_slice %161 {offsets = [4, 0, 0], sizes = [1, 10, 40], strides = [1, 1, 1]} : vector<5x10x40xf32> to vector<1x10x40xf32>
    %167 = arith.mulf %162, %163 : vector<1x10x40xf32>
    %168 = arith.mulf %162, %162 : vector<1x10x40xf32>
    %169 = arith.mulf %163, %163 : vector<1x10x40xf32>
    %170 = arith.addf %168, %169 : vector<1x10x40xf32>
    %cst_40 = arith.constant 2.000000e+00 : f32
    %171 = vector.broadcast %cst_40 : f32 to vector<1x10x40xf32>
    %172 = arith.mulf %171, %167 : vector<1x10x40xf32>
    %173 = vector.broadcast %134 : vector<1x1x40xf32> to vector<1x10x40xf32>
    %174 = arith.addf %172, %173 : vector<1x10x40xf32>
    %cst_41 = arith.constant 2.000000e+00 : f32
    %cst_42 = arith.constant 1.02083337 : f32
    %175 = arith.mulf %cst_41, %cst_42 : f32
    %176 = arith.subf %166, %167 : vector<1x10x40xf32>
    %177 = vector.broadcast %175 : f32 to vector<1x10x40xf32>
    %178 = arith.mulf %177, %176 : vector<1x10x40xf32>
    %179 = vector.broadcast %140 : vector<1x1x40xf32> to vector<1x10x40xf32>
    %180 = arith.addf %178, %179 : vector<1x10x40xf32>
    %181 = vector.broadcast %134 : vector<1x1x40xf32> to vector<1x10x40xf32>
    %182 = arith.addf %170, %181 : vector<1x10x40xf32>
    %183 = arith.addf %164, %165 : vector<1x10x40xf32>
    %184 = arith.subf %183, %170 : vector<1x10x40xf32>
    %cst_43 = arith.constant 1.02083337 : f32
    %185 = vector.broadcast %cst_43 : f32 to vector<1x10x40xf32>
    %186 = arith.mulf %185, %184 : vector<1x10x40xf32>
    %187 = vector.broadcast %140 : vector<1x1x40xf32> to vector<1x10x40xf32>
    %188 = arith.addf %186, %187 : vector<1x10x40xf32>
    %189 = arith.mulf %182, %188 : vector<1x10x40xf32>
    %190 = tpu.reciprocal %189 {approx = true} : vector<1x10x40xf32> -> vector<1x10x40xf32>
    %191 = arith.mulf %189, %190 : vector<1x10x40xf32>
    %cst_44 = arith.constant 2.000000e+00 : f32
    %192 = vector.broadcast %cst_44 : f32 to vector<1x10x40xf32>
    %193 = arith.subf %192, %191 : vector<1x10x40xf32>
    %194 = arith.mulf %190, %193 : vector<1x10x40xf32>
    %195 = arith.mulf %174, %180 : vector<1x10x40xf32>
    %196 = arith.mulf %195, %194 : vector<1x10x40xf32>
    %cst_45 = arith.constant dense<0.000000e+00> : vector<1x10xf32>
    %197 = vector.multi_reduction <add>, %196, %cst_45 [2] : vector<1x10x40xf32> to vector<1x10xf32>
    %198 = vector.shape_cast %197 : vector<1x10xf32> to vector<1x10x1xf32>
    %cst_46 = arith.constant dense<0.000000e+00> : vector<1x1xf32>
    %199 = vector.multi_reduction <add>, %198, %cst_46 [1] : vector<1x10x1xf32> to vector<1x1xf32>
    %200 = vector.shape_cast %199 : vector<1x1xf32> to vector<1x1x1xf32>
    %cst_47 = arith.constant dense<0.000000e+00> : vector<1x1xf32>
    %201 = vector.multi_reduction <add>, %200, %cst_47 [0] : vector<1x1x1xf32> to vector<1x1xf32>
    %202 = vector.shape_cast %201 : vector<1x1xf32> to vector<1x1x1xf32>
    %203 = arith.subf %0, %1 : vector<1x16x64xf32>
    %204 = math.absf %203 : vector<1x16x64xf32>
    %cst_48 = arith.constant dense<0.000000e+00> : vector<1x16xf32>
    %205 = vector.multi_reduction <add>, %204, %cst_48 [2] : vector<1x16x64xf32> to vector<1x16xf32>
    %206 = vector.shape_cast %205 : vector<1x16xf32> to vector<1x16x1xf32>
    %cst_49 = arith.constant dense<0.000000e+00> : vector<1x1xf32>
    %207 = vector.multi_reduction <add>, %206, %cst_49 [1] : vector<1x16x1xf32> to vector<1x1xf32>
    %208 = vector.shape_cast %207 : vector<1x1xf32> to vector<1x1x1xf32>
    %cst_50 = arith.constant dense<0.000000e+00> : vector<1x1xf32>
    %209 = vector.multi_reduction <add>, %208, %cst_50 [0] : vector<1x1x1xf32> to vector<1x1xf32>
    %210 = vector.shape_cast %209 : vector<1x1xf32> to vector<1x1x1xf32>
    %211 = tpu.iota {dimensions = array<i32: 1>} : vector<1x8x128xi32>
    %c0_i32_51 = arith.constant 0 : i32
    %212 = vector.broadcast %c0_i32_51 : i32 to vector<1x8x128xi32>
    %213 = arith.cmpi eq, %211, %212 : vector<1x8x128xi32>
    %cst_52 = arith.constant 0.000000e+00 : f32
    %214 = vector.shape_cast %202 : vector<1x1x1xf32> to vector<1x1x1xf32>
    %215 = vector.broadcast %214 : vector<1x1x1xf32> to vector<1x8x128xf32>
    %216 = vector.broadcast %cst_52 : f32 to vector<1x8x128xf32>
    %217 = arith.select %213, %215, %216 : vector<1x8x128xi1>, vector<1x8x128xf32>
    %c1_i32 = arith.constant 1 : i32
    %218 = vector.broadcast %c1_i32 : i32 to vector<1x8x128xi32>
    %219 = arith.cmpi eq, %211, %218 : vector<1x8x128xi32>
    %cst_53 = arith.constant 0.000000e+00 : f32
    %220 = vector.shape_cast %210 : vector<1x1x1xf32> to vector<1x1x1xf32>
    %221 = vector.broadcast %220 : vector<1x1x1xf32> to vector<1x8x128xf32>
    %222 = vector.broadcast %cst_53 : f32 to vector<1x8x128xf32>
    %223 = arith.select %219, %221, %222 : vector<1x8x128xi1>, vector<1x8x128xf32>
    %224 = arith.addf %217, %223 : vector<1x8x128xf32>
    %c0_54 = arith.constant 0 : index
    %c0_55 = arith.constant 0 : index
    %c0_56 = arith.constant 0 : index
    %225 = vector.load %arg4[%c0_54, %c0_55, %c0_56] : memref<1x8x128xf32, #tpu.memory_space<vmem>>, vector<1x8x128xf32>
    tpu.vector_store %arg4[%c0_54, %c0_55, %c0_56], %224 {strides = array<i32>} : memref<1x8x128xf32, #tpu.memory_space<vmem>>, vector<1x8x128xf32>,
    return
  }
  func.func @transform_0(%arg0: i32) -> (i32, i32, i32) {
    %c0_i32 = arith.constant 0 : i32
    %c0_i32_0 = arith.constant 0 : i32
    %c0_i32_1 = arith.constant 0 : i32
    return %arg0, %c0_i32, %c0_i32_0 : i32, i32, i32
  }
  func.func @transform_1(%arg0: i32) -> (i32, i32, i32) {
    %c0_i32 = arith.constant 0 : i32
    %c0_i32_0 = arith.constant 0 : i32
    %c0_i32_1 = arith.constant 0 : i32
    return %arg0, %c0_i32, %c0_i32_0 : i32, i32, i32
  }
  func.func @transform_2(%arg0: i32) -> (i32, i32) {
    %c0_i32 = arith.constant 0 : i32
    %c0_i32_0 = arith.constant 0 : i32
    %c0_i32_1 = arith.constant 0 : i32
    return %c0_i32, %c0_i32_0 : i32, i32
  }
  func.func @transform_3(%arg0: i32) -> (i32, i32, i32) {
    %c0_i32 = arith.constant 0 : i32
    %c0_i32_0 = arith.constant 0 : i32
    %c0_i32_1 = arith.constant 0 : i32
    return %arg0, %c0_i32, %c0_i32_0 : i32, i32, i32
  }
}

</mosaic_0001>

<bundles_post_ra>
// kernel: tpu_custom_call.1
= control target key start
LH: loop header
LB: loop body
LE: loop exit
PB: predicated region body
PF: predicated region fallthrough
CT: control target
= control target key end

     0   :  { %8 = vsyncpa [#allocation3], 0  ;;  %s1504_s0 = inlined_call_operand.vmem [shape: f32[2,16,64], index: 0, kind: input, shape index: {}]   ;;  %s1505_s1 = inlined_call_operand.vmem [shape: f32[2,16,64], index: 1, kind: input, shape index: {}]   ;;  %s1506_s2 = inlined_call_operand.vmem [shape: f32[64,40], index: 2, kind: input, shape index: {}]   ;;  %s1507_s3 = inlined_call_operand.hbm [shape: f32[2,8,128], index: 3, kind: output, shape index: {}]  }
   0x1   :  { %10 = vsyncpa [#allocation3 + $0x1], 0  ;;  %s1103_s12 = smov 0   ;;  %s1105_s13 = smov 0  }
   0x2   :  { %s1107_s14 = smov 0   ;;  %s1109_s15 = smov 0  }
   0x3 LB: > { %s1124_s16 = sadd.s32 4294967295, %s1080_s15   ;;  %s887_s17 = sadd.s32 4294967294, %s1080_s15   ;;  %s1080_s15 = sphi %s1109_s15, %s1525_s15   ;;  %s1076_s14 = sphi %s1107_s14, %s1524_s14   ;;  %s1072_s13 = sphi %s1105_s13, %s1523_s13   ;;  %s1068_s12 = sphi %s1103_s12, %s1522_s12  }
   0x4   : > { %s1128_s18 = sadd.s32 1, %s1080_s15   ;;  %s96_s19 = sadd.s32 1, %s1076_s14 }
   0x5   : > { %s93_s20 = ssub.s32 %s1080_s15, %s1128_s18  ;;  %p106_p0 = scmp.ne.s32.totalorder %s1076_s14, %s1072_s13 }
   0x6   : > { %p94_p1 = scmp.eq.s32.totalorder %s93_s20, 0  ;;  %p107_p2 = scmp.eq.s32.totalorder %s1124_s16, 1 }
   0x7   : > { %p112_p3 = scmp.ne.s32.totalorder %s1072_s13, %s1068_s12  ;;  %p113_p4 = scmp.eq.s32.totalorder %s887_s17, 1 }
   0x8   : > { %s1139_s21 = scalar_select %p94_p1, %s1076_s14, %s96_s19  }
   0x9   : > { %p1141_p5 = por %p107_p2, %p106_p0  ;;  %p1145_p6 = por %p113_p4, %p112_p3 }
   0xa   : > { %p890_p7 = scmp.ge.s32.totalorder %s1080_s15, 1  ;;  %p150_p8 = scmp.lt.s32.totalorder %s1080_s15, 3 }
   0xc   : > { %p151_p9 = pnand %p890_p7, %p150_p8 }
   0xd   : > { %p179_p10 = scmp.lt.s32.totalorder (!%p151_p9), %s1124_s16, 1  ;;  %s907_s5 = sshll.u32 (!%p151_p9), %s1124_s16, 7 }
   0xe   : > { %154 = sbr.rel (%p151_p9) target bundleno = 475 (0x1db), region = 32  ;;  %s814_s10 = scalar_lea.hbm (!%p151_p9), %s1507_s3, %s907_s5 }
   0xf   : > { %s1082_s19 = smov (!%p151_p9), [#allocation2]  }
  0x10   : > { %s1024_s20 = sshll.u32 (!%p151_p9), %s1082_s19, 4  ;;  %s1025_s20 = int_to_ptr.vmem [resolvable:$false] %s1024_s20 }
  0x13   : > { %v345_v0 = vld [vmem:[%s1506_s2 + $0x38] sm:$0xff]  ;;  %v344_v1 = vld [vmem:[%s1506_s2 + $0x30] sm:$0xff]  ;;  %v343_v2 = vld [vmem:[%s1506_s2 + $0x28] sm:$0xff]  ;;  %s180_s30 = scalar_select %p179_p10, %s1124_s16, 1  ;;  %vm193_vm0 = vcmask 523264   ;;  %vm232_vm1 = vcmask 130048  }
  0x14   : > { %930 = vmatprep.subr.mxu0 %v345_v0  ;;  %961 = vmatprep.subr.mxu1 %v345_v0  ;;  %v342_v3 = vld [vmem:[%s1506_s2 + $0x20] sm:$0xff]  ;;  %v341_v4 = vld [vmem:[%s1506_s2 + $0x18] sm:$0xff]  ;;  %v340_v8 = vld [vmem:[%s1506_s2 + $0x10] sm:$0xff]  ;;  %vm257_vm2 = vcmask 261248   ;;  %vm282_vm3 = vcmask 392448   ;;  %vm307_vm4 = vcmask 523648  }
  0x15   : > { %931 = vmatpush3.msra.mxu0 %v345_v0  ;;  %969 = vmatpush3.msra.mxu1 %v345_v0  ;;  %s910_s6 = sshll.u32 %s180_s30, 4  ;;  %v339_v16 = vld [vmem:[%s1506_s2 + $0x8] sm:$0xff]  ;;  %v338_v24 = vld [vmem:[%s1506_s2] sm:$0xff]  ;;  %vm501_vm15 = vcmask 1046528   ;;  %s176_s30 = sand.u32 1, %s1072_s13  }
  0x16   : > { %932 = vmatprep.subr.mxu0 %v344_v1  ;;  %962 = vmatprep.subr.mxu1 %v344_v1  ;;  %s183_s9 = scalar_lea.vmem %s1504_s0, %s910_s6  ;;  %s188_s17 = scalar_lea.vmem %s1505_s1, %s910_s6 }
  0x17   : > { %933 = vmatpush3.msra.mxu0 %v344_v1  ;;  %970 = vmatpush3.msra.mxu1 %v344_v1  ;;  %v1174_v5 = vld [vmem:[%s188_s17] sm:$0xff]  ;;  %v1176_v6 = vld [vmem:[%s188_s17 + $0x8] sm:$0xff]  ;;  %s891_s4 = sshll.u32 %s176_s30, 3  ;;  %s803_s11 = scalar_lea.sflag [#allocation3], %s176_s30 }
  0x18   : > { %934 = vmatprep.subr.mxu0 %v343_v2  ;;  %963 = vmatprep.subr.mxu1 %v343_v2  ;;  %v212_v7 = vsel %vm193_vm0, %v1174_v5, -inf  ;;  %v1183_v9 = vld [vmem:[%s183_s9] sm:$0xff]  ;;  %v1185_v10 = vld [vmem:[%s183_s9 + $0x8] sm:$0xff]  ;;  %v213_v11 = vsel %vm193_vm0, %v1176_v6, -inf  ;;  %v221_v15 = vsel %vm193_vm0, %v1174_v5, inf  ;;  %v222_v18 = vsel %vm193_vm0, %v1176_v6, inf }
  0x19   : > { %935 = vmatpush3.msra.mxu0 %v343_v2  ;;  %971 = vmatpush3.msra.mxu1 %v343_v2  ;;  %v214_v12 = vmax.f32 %v212_v7, %v213_v11  ;;  %v194_v13 = vsel %vm193_vm0, %v1183_v9, -inf  ;;  %v195_v14 = vsel %vm193_vm0, %v1185_v10, -inf  ;;  %v203_v19 = vsel %vm193_vm0, %v1183_v9, inf  ;;  %s178_s6 = scalar_lea.vmem [#allocation2], %s891_s4  ;;  %s1026_s16 = scalar_lea.vmem %s1025_s20, 256 }
  0x1a   : > { %936 = vmatprep.subr.mxu0 %v342_v3  ;;  %964 = vmatprep.subr.mxu1 %v342_v3  ;;  %v196_v17 = vmax.f32 %v194_v13, %v195_v14  ;;  %v204_v20 = vsel %vm193_vm0, %v1185_v10, inf  ;;  %v223_v22 = vmin.f32 %v221_v15, %v222_v18  ;;  %v334_v26 = vmul.f32 %v1174_v5, %v1174_v5  ;;  %s816_s7 = sshll.u32 %s178_s6, 4  ;;  %s817_s7 = int_to_ptr.vmem [resolvable:$true] %s816_s7 }
  0x1b   : > { %937 = vmatpush3.msra.mxu0 %v342_v3  ;;  %972 = vmatpush3.msra.mxu1 %v342_v3  ;;  %v215_v21 = vrot.slane %v214_v12, 4  ;;  %v205_v23 = vmin.f32 %v203_v19, %v204_v20  ;;  %v335_v30 = vmul.f32 %v1176_v6, %v1176_v6  ;;  %v336_v32 = vmul.f32 %v1174_v5, %v1183_v9  ;;  %s1020_s17 = scalar_lea.vmem %s817_s7, 128  ;;  %p1027_p0 = scmp.lt.s32.totalorder %s817_s7, %s1025_s20 }
  0x1c   : > { %938 = vmatprep.subr.mxu0 %v341_v4  ;;  %965 = vmatprep.subr.mxu1 %v341_v4  ;;  %v197_v25 = vrot.slane %v196_v17, 4  ;;  %v224_v28 = vrot.slane %v223_v22, 4  ;;  %v337_v40 = vmul.f32 %v1176_v6, %v1185_v10  ;;  %v332_v42 = vmul.f32 %v1183_v9, %v1183_v9  ;;  %p1021_p11 = scmp.ne.s32.totalorder %s817_s7, %s1020_s17  ;;  %p1028_p1 = scmp.lt.s32.totalorder %s1026_s16, %s1020_s17 }
  0x1d   : > { %939 = vmatpush3.msra.mxu0 %v341_v4  ;;  %973 = vmatpush3.msra.mxu1 %v341_v4  ;;  %v216_v27 = vmax.f32 %v214_v12, %v215_v21  ;;  %v206_v29 = vrot.slane %v205_v23, 4  ;;  %v333_v50 = vmul.f32 %v1185_v10, %v1185_v10 }
  0x1e   : > { %940 = vmatprep.subr.mxu0 %v340_v8  ;;  %966 = vmatprep.subr.mxu1 %v340_v8  ;;  %v198_v31 = vmax.f32 %v196_v17, %v197_v25  ;;  %v225_v34 = vmin.f32 %v223_v22, %v224_v28  ;;  %v1508_v28 = vlaneseq  ;;  %p1022_p12 = pnand %p1021_p11, %p1141_p5  ;;  %p1029_p2 = por %p1028_p1, %p1027_p0 }
  0x1f   : > { %941 = vmatpush3.msra.mxu0 %v340_v8  ;;  %974 = vmatpush3.msra.mxu1 %v340_v8  ;;  %v217_v33 = vrot.slane %v216_v27, 2  ;;  %v207_v35 = vmin.f32 %v205_v23, %v206_v29 }
  0x20   : > { %942 = vmatprep.subr.mxu0 %v339_v16  ;;  %967 = vmatprep.subr.mxu1 %v339_v16  ;;  %v199_v36 = vrot.slane %v198_v31, 2  ;;  %v226_v38 = vrot.slane %v225_v34, 2  ;;  %p1023_p13 = pneg %p1022_p12 }
  0x21   : > { %943 = vmatpush3.msra.mxu0 %v339_v16  ;;  %975 = vmatpush3.msra.mxu1 %v339_v16  ;;  %v218_v37 = vmax.f32 %v216_v27, %v217_v33  ;;  %v208_v39 = vrot.slane %v207_v35, 2 }
  0x22   : > { %944 = vmatprep.subr.mxu0 %v338_v24  ;;  %968 = vmatprep.subr.mxu1 %v338_v24  ;;  %v200_v41 = vmax.f32 %v198_v31, %v199_v36  ;;  %v227_v44 = vmin.f32 %v225_v34, %v226_v38  ;;  %p1030_p3 = pnand %p1029_p2, %p1023_p13 }
  0x23   : > { %945 = vmatpush3.msra.mxu0 %v338_v24  ;;  %976 = vmatpush3.msra.mxu1 %v338_v24  ;;  %v219_v43 = vrot.slane %v218_v37, 1  ;;  %v209_v45 = vmin.f32 %v207_v35, %v208_v39  ;;  %v231_v35 = vand.u32 127, %v1508_v28 }
  0x24   : > { %946 = vmatprep.mubr.msk.f32.mxu0 %vm193_vm0, %v1183_v9  ;;  %955 = vmatprep.mubr.msk.f32.mxu1 %vm193_vm0, %v334_v26  ;;  %v201_v46 = vrot.slane %v200_v41, 1  ;;  %v228_v48 = vrot.slane %v227_v44, 1 }
  0x25   : > { %947 = vmatmul.mubr.msk.f32.vlgmr.msra.gmra.mxu0 %vm193_vm0, %v1185_v10  ;;  %956 = vmatmul.mubr.msk.f32.vlgmr.msra.gmra.mxu1 %vm193_vm0, %v335_v30  ;;  %v220_v47 = vmax.f32 %v218_v37, %v219_v43  ;;  %v210_v49 = vrot.slane %v209_v45, 1  ;;  %vm249_vm5 = vcmp.lt.s32.totalorder %v231_v35, 10  ;;  %vm273_vm6 = vcmp.ge.s32.totalorder %v231_v35, 10 }
  0x26   : > { %949 = vmatprep.mubr.msk.f32.mxu0 %vm193_vm0, %v1174_v5  ;;  %958 = vmatprep.mubr.msk.f32.mxu1 %vm193_vm0, %v336_v32  ;;  %v202_v51 = vmax.f32 %v200_v41, %v201_v46  ;;  %v229_v53 = vmin.f32 %v227_v44, %v228_v48  ;;  %vm274_vm7 = vcmp.lt.s32.totalorder %v231_v35, 20  ;;  %vm298_vm9 = vcmp.ge.s32.totalorder %v231_v35, 20 }
  0x27   : > { %v240_v52 = vsel %vm232_vm1, %v220_v47, -inf  ;;  %v211_v54 = vmin.f32 %v209_v45, %v210_v49  ;;  %v265_v61 = vsel %vm257_vm2, %v220_v47, -inf  ;;  %v290_v1 = vsel %vm282_vm3, %v220_v47, -inf  ;;  %vm1239_vm8 = vmand %vm273_vm6, %vm274_vm7 }
  0x28   : > { %241 = vmax.xlane.f32.xlu1 %v240_v52  ;;  %v233_v55 = vsel %vm232_vm1, %v202_v51, -inf  ;;  %v243_v56 = vsel %vm232_vm1, %v229_v53, inf  ;;  %v258_v59 = vsel %vm257_vm2, %v202_v51, -inf  ;;  %v268_v60 = vsel %vm257_vm2, %v229_v53, inf }
  0x29   : > { %950 = vmatmul.mubr.msk.f32.gmra.mxu0 %vm193_vm0, %v1176_v6  ;;  %959 = vmatmul.mubr.msk.f32.gmra.mxu1 %vm193_vm0, %v337_v40  ;;  %v236_v57 = vsel %vm232_vm1, %v211_v54, inf  ;;  %v261_v58 = vsel %vm257_vm2, %v211_v54, inf  ;;  %v286_v62 = vsel %vm282_vm3, %v211_v54, inf  ;;  %v283_v63 = vsel %vm282_vm3, %v202_v51, -inf }
  0x2a   : > { %952 = vmatprep.mubr.msk.f32.mxu0 %vm193_vm0, %v332_v42  ;;  %234 = vmax.xlane.f32.xlu0 %v233_v55  ;;  %v293_v0 = vsel %vm282_vm3, %v229_v53, inf  ;;  %v311_v2 = vsel %vm307_vm4, %v211_v54, inf  ;;  %v308_v3 = vsel %vm307_vm4, %v202_v51, -inf  ;;  %v318_v4 = vsel %vm307_vm4, %v229_v53, inf }
  0x2b   : > { %v315_v7 = vsel %vm307_vm4, %v220_v47, -inf  ;;  %vm299_vm10 = vcmp.lt.s32.totalorder %v231_v35, 30  ;;  %vm323_vm11 = vcmp.ge.s32.totalorder %v231_v35, 30  ;;  %vm324_vm12 = vcmp.lt.s32.totalorder %v231_v35, 40 }
  0x2c   : > { %244 = vmin.xlane.f32.xlu1 %v243_v56  ;;  %vm1250_vm13 = vmand %vm298_vm9, %vm299_vm10  ;;  %vm537_vm1 = vcmask 1045504   ;;  %vm573_vm2 = vcmask 1044480   ;;  %vm609_vm3 = vcmask 1043456   ;;  %vm645_vm4 = vcmask 1042432  }
  0x2d   : > { %953 = vmatmul.mubr.msk.f32.gmra.mxu0 %vm193_vm0, %v333_v50  ;;  %vm1269_vm14 = vmand %vm323_vm11, %vm324_vm12  ;;  %vm763_vm6 = vcmask 320512   ;;  %vm759_vm7 = vcmask 326656  }
  0x2e   : > { %237 = vmin.xlane.f32.xlu0 %v236_v57 }
  0x30   : > { %262 = vmin.xlane.f32.xlu1 %v261_v58 }
  0x32   : > { %259 = vmax.xlane.f32.xlu0 %v258_v59 }
  0x34   : > { %269 = vmin.xlane.f32.xlu1 %v268_v60 }
  0x36   : > { %266 = vmax.xlane.f32.xlu0 %v265_v61 }
  0x38   : > { %287 = vmin.xlane.f32.xlu1 %v286_v62 }
  0x3a   : > { %284 = vmax.xlane.f32.xlu0 %v283_v63 }
  0x3c   : > { %294 = vmin.xlane.f32.xlu1 %v293_v0 }
  0x3e   : > { %291 = vmax.xlane.f32.xlu0 %v290_v1 }
  0x40   : > { %312 = vmin.xlane.f32.xlu1 %v311_v2 }
  0x42   : > { %309 = vmax.xlane.f32.xlu0 %v308_v3 }
  0x44   : > { %319 = vmin.xlane.f32.xlu1 %v318_v4 }
  0x46   : > { %316 = vmax.xlane.f32.xlu0 %v315_v7 }
  0xb1   : > { %v242_v8 = vpop.xlane.xlu1 %241 }
  0xb3   : > { %v235_v11 = vpop.xlane.xlu0 %234 }
  0xb5   : > { %v245_v12 = vpop.xlane.xlu1 %244 }
  0xb6   : > { %v246_v22 = vsub.f32 %v242_v8, %v245_v12 }
  0xb7   : > { %v238_v13 = vpop.xlane.xlu0 %237 }
  0xb8   : > { %v239_v23 = vsub.f32 %v235_v11, %v238_v13 }
  0xb9   : > { %v263_v14 = vpop.xlane.xlu1 %262 }
  0xba   : > { %v247_v29 = vmax.f32 %v239_v23, %v246_v22 }
  0xbb   : > { %v260_v15 = vpop.xlane.xlu0 %259 }
  0xbc   : > { %v264_v26 = vsub.f32 %v260_v15, %v263_v14  ;;  %v251_v36 = vmul.f32 0.01, %v247_v29  ;;  %v254_v39 = vmul.f32 0.03, %v247_v29 }
  0xbd   : > { %v270_v16 = vpop.xlane.xlu1 %269 }
  0xbe   : > { %v252_v42 = vmul.f32 %v251_v36, %v251_v36  ;;  %v255_v45 = vmul.f32 %v254_v39, %v254_v39 }
  0xbf   : > { %v267_v17 = vpop.xlane.xlu0 %266 }
  0xc0   : > { %v271_v27 = vsub.f32 %v267_v17, %v270_v16  ;;  %v253_v48 = vsel %vm249_vm5, %v252_v42, 0.0  ;;  %v256_v55 = vsel %vm249_vm5, %v255_v45, 0.0  ;;  %vm681_vm5 = vcmask 1041408  }
  0xc1   : > { %v288_v18 = vpop.xlane.xlu1 %287 }
  0xc2   : > { %v272_v34 = vmax.f32 %v264_v26, %v271_v27 }
  0xc3   : > { %v285_v19 = vpop.xlane.xlu0 %284 }
  0xc4   : > { %v289_v30 = vsub.f32 %v285_v19, %v288_v18  ;;  %v276_v41 = vmul.f32 0.01, %v272_v34  ;;  %v279_v43 = vmul.f32 0.03, %v272_v34 }
  0xc5   : > { %v295_v20 = vpop.xlane.xlu1 %294 }
  0xc6   : > { %v277_v47 = vmul.f32 %v276_v41, %v276_v41  ;;  %v280_v51 = vmul.f32 %v279_v43, %v279_v43 }
  0xc7   : > { %v292_v21 = vpop.xlane.xlu0 %291 }
  0xc8   : > { %v296_v31 = vsub.f32 %v292_v21, %v295_v20  ;;  %v278_v57 = vsel %vm1239_vm8, %v277_v47, %v253_v48  ;;  %v281_v2 = vsel %vm1239_vm8, %v280_v51, %v256_v55 }
  0xc9   : > { %v313_v24 = vpop.xlane.xlu1 %312 }
  0xca   : > { %v297_v40 = vmax.f32 %v289_v30, %v296_v31 }
  0xcb   : > { %v310_v25 = vpop.xlane.xlu0 %309 }
  0xcc   : > { %v314_v37 = vsub.f32 %v310_v25, %v313_v24  ;;  %v301_v46 = vmul.f32 0.01, %v297_v40  ;;  %v304_v50 = vmul.f32 0.03, %v297_v40 }
  0xcd   : > { %v320_v32 = vpop.xlane.xlu1 %319 }
  0xce   : > { %v302_v56 = vmul.f32 %v301_v46, %v301_v46  ;;  %v305_v63 = vmul.f32 %v304_v50, %v304_v50 }
  0xcf   : > { %v317_v33 = vpop.xlane.xlu0 %316 }
  0xd0   : > { %v321_v38 = vsub.f32 %v317_v33, %v320_v32  ;;  %v303_v8 = vsel %vm1250_vm13, %v302_v56, %v278_v57  ;;  %v1280_v17 = vsel %vm1250_vm13, %v305_v63, %v281_v2 }
  0xd2   : > { %v322_v44 = vmax.f32 %v314_v37, %v321_v38 }
  0xd4   : > { %v326_v52 = vmul.f32 0.01, %v322_v44  ;;  %v329_v0 = vmul.f32 0.03, %v322_v44 }
  0xd6   : > { %v327_v3 = vmul.f32 %v326_v52, %v326_v52  ;;  %v1282_v18 = vmul.f32 %v329_v0, %v329_v0 }
  0xd8   : > { %v1287_v20 = vsel %vm1269_vm14, %v327_v3, %v303_v8 }
  0xe5   : > { %v1243_v53 = vpop.f32.mrf.mxu0  ;;  %v1245_v54 = vpop.f32.mrf.mxu1 }
  0xe6   : > { %v503_v59 = vrot.slane %v1243_v53, 1  ;;  %v512_v60 = vrot.slane %v1245_v54, 1  ;;  %v548_v61 = vrot.slane %v1245_v54, 2  ;;  %v584_v14 = vrot.slane %v1245_v54, 3 }
  0xe7   : > { %v1257_v62 = vpop.f32.mrf.mxu0  ;;  %v1259_v1 = vpop.f32.mrf.mxu1  ;;  %v539_v21 = vrot.slane %v1243_v53, 2  ;;  %v575_v24 = vrot.slane %v1243_v53, 3  ;;  %v611_v25 = vrot.slane %v1243_v53, 4  ;;  %v647_v26 = vrot.slane %v1243_v53, 5 }
  0xe8   : > { %v534_v4 = vadd.f32 %v1245_v54, %v512_v60  ;;  %v502_v7 = vrot.slane %v1257_v62, 1  ;;  %v528_v12 = vadd.f32 %v1243_v53, %v503_v59  ;;  %v511_v15 = vrot.slane %v1259_v1, 1 }
  0xe9   : > { %v1276_v16 = vpop.f32.mrf.mxu0  ;;  %v547_v19 = vrot.slane %v1259_v1, 2  ;;  %v620_v27 = vrot.slane %v1245_v54, 4  ;;  %v538_v31 = vrot.slane %v1257_v62, 2  ;;  %v583_v36 = vrot.slane %v1259_v1, 3  ;;  %v1333_v2 = vpop.f32.mrf.mxu1 }
  0xea   : > { %v570_v13 = vadd.f32 %v548_v61, %v534_v4  ;;  %v504_v22 = vsel %vm501_vm15, %v502_v7, %v503_v59  ;;  %v513_v23 = vsel %vm501_vm15, %v511_v15, %v512_v60  ;;  %v564_v29 = vadd.f32 %v539_v21, %v528_v12 }
  0xeb   : > { %v533_v32 = vadd.f32 %v513_v23, %v1259_v1  ;;  %v1298_v33 = vpop.f32.mrf.mxu0  ;;  %v527_v34 = vadd.f32 %v504_v22, %v1257_v62  ;;  %v549_v35 = vsel %vm537_vm1, %v547_v19, %v548_v61  ;;  %v506_v37 = vrot.slane %v1276_v16, 1 }
  0xec   : > { %v606_v30 = vadd.f32 %v584_v14, %v570_v13  ;;  %v656_v38 = vrot.slane %v1245_v54, 5  ;;  %v692_v39 = vrot.slane %v1245_v54, 6  ;;  %v619_v40 = vrot.slane %v1259_v1, 4 }
  0xed   : > { %v655_v41 = vrot.slane %v1259_v1, 5  ;;  %v574_v42 = vrot.slane %v1257_v62, 3  ;;  %v610_v43 = vrot.slane %v1257_v62, 4  ;;  %v646_v44 = vrot.slane %v1257_v62, 5  ;;  %v1314_v50 = vpop.f32.mrf.mxu0 }
  0xee   : > { %v505_v45 = vrot.slane %v1298_v33, 1  ;;  %v642_v46 = vadd.f32 %v620_v27, %v606_v30  ;;  %v540_v47 = vsel %vm537_vm1, %v538_v31, %v539_v21  ;;  %v569_v49 = vadd.f32 %v549_v35, %v533_v32 }
  0xef   : > { %v600_v51 = vadd.f32 %v575_v24, %v564_v29  ;;  %v1318_v52 = vadd.f32 %v540_v47, %v527_v34  ;;  %v585_v55 = vsel %vm573_vm2, %v583_v36, %v584_v14  ;;  %v530_v56 = vadd.f32 %v1276_v16, %v506_v37  ;;  %v1343_v21 = vpop.f32.mrf.mxu0  ;;  %v1360_v47 = vpop.f32.mrf.mxu1 }
  0xf0   : > { %v1323_v57 = vsel %vm609_vm3, %v619_v40, %v620_v27  ;;  %v1326_v58 = vsel %vm645_vm4, %v655_v41, %v656_v38  ;;  %v542_v60 = vrot.slane %v1276_v16, 2  ;;  %v578_v61 = vrot.slane %v1276_v16, 3 }
  0xf1   : > { %v507_v63 = vsel %vm501_vm15, %v505_v45, %v506_v37  ;;  %v541_v0 = vrot.slane %v1298_v33, 2  ;;  %v509_v3 = vrot.slane %v1314_v50, 1  ;;  %v678_v4 = vadd.f32 %v656_v38, %v642_v46 }
  0xf2   : > { %v1336_v7 = vadd.f32 %v585_v55, %v569_v49  ;;  %v614_v8 = vrot.slane %v1276_v16, 4  ;;  %v650_v12 = vrot.slane %v1276_v16, 5  ;;  %v566_v13 = vadd.f32 %v542_v60, %v530_v56 }
  0xf3   : > { %v577_v14 = vrot.slane %v1298_v33, 3  ;;  %v532_v15 = vadd.f32 %v1314_v50, %v509_v3  ;;  %v545_v19 = vrot.slane %v1314_v50, 2  ;;  %v529_v22 = vadd.f32 %v507_v63, %v1298_v33 }
  0xf4   : > { %v613_v23 = vrot.slane %v1298_v33, 4  ;;  %v515_v29 = vrot.slane %v1333_v2, 1  ;;  %v543_v30 = vsel %vm537_vm1, %v541_v0, %v542_v60  ;;  %v581_v34 = vrot.slane %v1314_v50, 3 }
  0xf5   : > { %v568_v32 = vadd.f32 %v545_v19, %v532_v15  ;;  %v551_v35 = vrot.slane %v1333_v2, 2  ;;  %v587_v36 = vrot.slane %v1333_v2, 3  ;;  %v508_v37 = vrot.slane %v1343_v21, 1 }
  0xf6   : > { %v544_v38 = vrot.slane %v1343_v21, 2  ;;  %v602_v40 = vadd.f32 %v578_v61, %v566_v13  ;;  %v623_v41 = vrot.slane %v1333_v2, 4  ;;  %v617_v46 = vrot.slane %v1314_v50, 4 }
  0xf7   : > { %v604_v45 = vadd.f32 %v581_v34, %v568_v32  ;;  %v565_v49 = vadd.f32 %v543_v30, %v529_v22  ;;  %v536_v55 = vadd.f32 %v1333_v2, %v515_v29  ;;  %v510_v56 = vsel %vm501_vm15, %v508_v37, %v509_v3 }
  0xf8   : > { %v580_v60 = vrot.slane %v1343_v21, 3  ;;  %v653_v0 = vrot.slane %v1314_v50, 5  ;;  %v689_v15 = vrot.slane %v1314_v50, 6  ;;  %v531_v13 = vadd.f32 %v510_v56, %v1343_v21 }
  0xf9   : > { %v640_v63 = vadd.f32 %v617_v46, %v604_v45  ;;  %v514_v32 = vrot.slane %v1360_v47, 1  ;;  %v550_v28 = vrot.slane %v1360_v47, 2  ;;  %v546_v59 = vsel %vm537_vm1, %v544_v38, %v545_v19 }
  0xfa   : > { %v616_v22 = vrot.slane %v1343_v21, 4  ;;  %v567_v31 = vadd.f32 %v546_v59, %v531_v13  ;;  %v636_v3 = vadd.f32 %v611_v25, %v600_v51  ;;  %v638_v37 = vadd.f32 %v614_v8, %v602_v40 }
  0xfb   : > { %v676_v30 = vadd.f32 %v653_v0, %v640_v63  ;;  %v572_v50 = vadd.f32 %v551_v35, %v536_v55  ;;  %v582_v45 = vsel %vm573_vm2, %v580_v60, %v581_v34  ;;  %v652_v56 = vrot.slane %v1343_v21, 5 }
  0xfc   : > { %v683_v48 = vrot.slane %v1243_v53, 6  ;;  %v603_v27 = vadd.f32 %v582_v45, %v567_v31  ;;  %v672_v19 = vadd.f32 %v647_v26, %v636_v3  ;;  %v674_v59 = vadd.f32 %v650_v12, %v638_v37 }
  0xfd   : > { %v686_v38 = vrot.slane %v1276_v16, 6  ;;  %v618_v51 = vsel %vm609_vm3, %v616_v22, %v617_v46  ;;  %v712_v63 = vadd.f32 %v689_v15, %v676_v30  ;;  %v714_v40 = vadd.f32 %v692_v39, %v678_v4 }
  0xfe   : > { %v576_v31 = vsel %vm573_vm2, %v574_v42, %v575_v24  ;;  %v639_v34 = vadd.f32 %v618_v51, %v603_v27  ;;  %v708_v55 = vadd.f32 %v683_v48, %v672_v19  ;;  %v579_v13 = vsel %vm573_vm2, %v577_v14, %v578_v61 }
  0xff   : > { %v710_v60 = vadd.f32 %v686_v38, %v674_v59  ;;  %v516_v3 = vsel %vm501_vm15, %v514_v32, %v515_v29  ;;  %v688_v46 = vrot.slane %v1343_v21, 6  ;;  %v599_v22 = vadd.f32 %v576_v31, %v1318_v52 }
 0x100   : > { %v601_v4 = vadd.f32 %v579_v13, %v565_v49  ;;  %v608_v30 = vadd.f32 %v587_v36, %v572_v50  ;;  %v720_v37 = vmul.f32 %v708_v55, %v708_v55  ;;  %v738_v24 = vadd.f32 %v714_v40, %v712_v63 }
 0x101   : > { %v722_v45 = vmul.f32 %v710_v60, %v710_v60  ;;  %v641_v42 = vadd.f32 %v1323_v57, %v1336_v7  ;;  %v552_v27 = vsel %vm537_vm1, %v550_v28, %v551_v35  ;;  %v586_v61 = vrot.slane %v1360_v47, 3 }
 0x102   : > { %v654_v14 = vsel %vm645_vm4, %v652_v56, %v653_v0  ;;  %v612_v52 = vsel %vm609_vm3, %v610_v43, %v611_v25  ;;  %v615_v57 = vsel %vm609_vm3, %v613_v23, %v614_v8  ;;  %v535_v28 = vadd.f32 %v516_v3, %v1360_v47 }
 0x103   : > { %v675_v29 = vadd.f32 %v654_v14, %v639_v34  ;;  %v724_v21 = vadd.f32 %v722_v45, %v720_v37  ;;  %v690_v7 = vsel %vm681_vm5, %v688_v46, %v689_v15  ;;  %v635_v35 = vadd.f32 %v612_v52, %v599_v22 }
 0x104   : > { %v637_v49 = vadd.f32 %v615_v57, %v601_v4  ;;  %v644_v0 = vadd.f32 %v623_v41, %v608_v30  ;;  %v648_v25 = vsel %vm645_vm4, %v646_v44, %v647_v26  ;;  %v1517_v43 = vrot.slane %v1298_v33, 5 }
 0x105   : > { %v740_v32 = vsub.f32 %v738_v24, %v724_v21  ;;  %v659_v23 = vrot.slane %v1333_v2, 5  ;;  %v671_v15 = vadd.f32 %v648_v25, %v635_v35  ;;  %v677_v56 = vadd.f32 %v1326_v58, %v641_v42 }
 0x106   : > { %v651_v8 = vsel %vm645_vm4, %v1517_v43, %v650_v12  ;;  %v331_v53 = vsel %vm1269_vm14, %v1282_v18, %v1280_v17  ;;  %v711_v19 = vadd.f32 %v690_v7, %v675_v29  ;;  %v1518_v26 = vrot.slane %v1257_v62, 6 }
 0x107   : > { %v673_v50 = vadd.f32 %v651_v8, %v637_v49  ;;  %v742_v59 = vmul.f32 1.0208334, %v740_v32  ;;  %v571_v44 = vadd.f32 %v552_v27, %v535_v28  ;;  %v1519_v12 = vrot.slane %v1298_v33, 6 }
 0x108   : > { %v684_v16 = vsel %vm681_vm5, %v1518_v26, %v683_v48  ;;  %v1520_v58 = vrot.slane %v1259_v1, 6  ;;  %v736_v11 = vadd.f32 %v724_v21, %v1287_v20  ;;  %v588_v62 = vsel %vm573_vm2, %v586_v61, %v587_v36 }
 0x109   : > { %v687_v51 = vsel %vm681_vm5, %v1519_v12, %v686_v38  ;;  %v707_v40 = vadd.f32 %v684_v16, %v671_v15  ;;  %v744_v17 = vadd.f32 %v742_v59, %v331_v53  ;;  %v622_v33 = vrot.slane %v1360_v47, 4 }
 0x10a   : > { %v693_v63 = vsel %vm681_vm5, %v1520_v58, %v692_v39  ;;  %v709_v18 = vadd.f32 %v687_v51, %v673_v50  ;;  %v680_v48 = vadd.f32 %v659_v23, %v644_v0  ;;  %v695_v38 = vrot.slane %v1333_v2, 6 }
 0x10b   : > { %v713_v31 = vadd.f32 %v693_v63, %v677_v56  ;;  %v746_v54 = vmul.f32 %v744_v17, %v736_v11  ;;  %v719_v34 = vmul.f32 %v707_v40, %v707_v40  ;;  %v607_v39 = vadd.f32 %v588_v62, %v571_v44 }
 0x10c   : > { %v721_v1 = vmul.f32 %v709_v18, %v709_v18  ;;  %v658_v46 = vrot.slane %v1360_v47, 5  ;;  %v624_v22 = vsel %vm609_vm3, %v622_v33, %v623_v41  ;;  %v716_v4 = vadd.f32 %v695_v38, %v680_v48 }
 0x10d   : > { %v737_v13 = vadd.f32 %v713_v31, %v711_v19  ;;  %1016 = vrcp.f32 %v746_v54  ;;  %v718_v36 = vmul.f32 %v710_v60, %v708_v55  ;;  %v643_v37 = vadd.f32 %v624_v22, %v607_v39 }
 0x10e   : > { %v723_v3 = vadd.f32 %v721_v1, %v719_v34  ;;  %v694_v24 = vrot.slane %v1360_v47, 6  ;;  %v660_v42 = vsel %vm645_vm4, %v658_v46, %v659_v23  ;;  %v717_v55 = vmul.f32 %v709_v18, %v707_v40 }
 0x10f   : > { %v730_v27 = vsub.f32 %v716_v4, %v718_v36  ;;  %v679_v29 = vadd.f32 %v660_v42, %v643_v37  ;;  %v726_v41 = vmul.f32 2.0, %v718_v36  ;;  %v776_v0 = vsub.f32 %v1183_v9, %v1174_v5 }
 0x110   : > { %v739_v30 = vsub.f32 %v737_v13, %v723_v3  ;;  %v735_v61 = vadd.f32 %v723_v3, %v1287_v20  ;;  %v696_v52 = vsel %vm681_vm5, %v694_v24, %v695_v38  ;;  %v725_v50 = vmul.f32 2.0, %v717_v55 }
 0x111   : > { %v732_v2 = vmul.f32 2.0416667, %v730_v27  ;;  %v715_v57 = vadd.f32 %v696_v52, %v679_v29  ;;  %v728_v47 = vadd.f32 %v726_v41, %v1287_v20  ;;  %v778_v23 = vand.u32 2147483647, %v776_v0 }
 0x112   : > { %v741_v45 = vmul.f32 1.0208334, %v739_v30  ;;  %v727_v16 = vadd.f32 %v725_v50, %v1287_v20  ;;  %v777_v5 = vsub.f32 %v1185_v10, %v1176_v6  ;;  %v1521_v13 = vlaneseq }
 0x113   : > { %v734_v28 = vadd.f32 %v732_v2, %v331_v53  ;;  %v729_v49 = vsub.f32 %v715_v57, %v717_v55  ;;  %v780_v26 = vsel %vm193_vm0, %v778_v23, 0.0 }
 0x114   : > { %v743_v14 = vadd.f32 %v741_v45, %v331_v53  ;;  %v779_v58 = vand.u32 2147483647, %v777_v5  ;;  %v795_v39 = vshrl.u32 %v1521_v13, 7 }
 0x115   : > { %v756_v25 = vmul.f32 %v734_v28, %v728_v47  ;;  %v731_v8 = vmul.f32 2.0416667, %v729_v49 }
 0x116   : > { %v745_v21 = vmul.f32 %v743_v14, %v735_v61  ;;  %vm798_vm8 = vcmp.eq.s32.totalorder %v795_v39, 1 }
 0x117   : > { %v733_v19 = vadd.f32 %v731_v8, %v331_v53  ;;  %v783_v53 = vsel %vm193_vm0, %v779_v58, 0.0  ;;  %vm796_vm0 = vcmp.eq.s32.totalorder %v795_v39, 0 }
 0x118   : > { %1018 = vrcp.f32 %v745_v21 }
 0x119   : > { %v755_v12 = vmul.f32 %v733_v19, %v727_v16 }
 0x11a   : > { %v1017_v60 = vpop.eup %1016 }
 0x11b   : > { %v750_v7 = vmul.f32 %v1017_v60, %v746_v54 }
 0x11d   : > { %v752_v35 = vsub.f32 2.0, %v750_v7 }
 0x11f   : > { %v754_v32 = vmul.f32 %v1017_v60, %v752_v35 }
 0x121   : > { %v758_v43 = vmul.f32 %v756_v25, %v754_v32 }
 0x123   : > { %v764_v15 = vsel %vm763_vm6, %v758_v43, 0.0 }
 0x124   : > { %765 = vadd.xlane.f32.xlu0 %v764_v15 }
 0x125   : > { %v1019_v56 = vpop.eup %1018 }
 0x126   : > { %v749_v59 = vmul.f32 %v1019_v56, %v745_v21 }
 0x128   : > { %v751_v44 = vsub.f32 2.0, %v749_v59  ;;  %781 = vadd.xlane.f32.xlu0 %v780_v26 }
 0x12a   : > { %v753_v9 = vmul.f32 %v1019_v56, %v751_v44 }
 0x12c   : > { %v757_v51 = vmul.f32 %v755_v12, %v753_v9 }
 0x12e   : > { %v760_v63 = vsel %vm759_vm7, %v757_v51, 0.0 }
 0x12f   : > { %761 = vadd.xlane.f32.xlu1 %v760_v63 }
 0x133   : > { %784 = vadd.xlane.f32.xlu1 %v783_v53 }
 0x1ad   : > { %v766_v40 = vpop.xlane.xlu0 %765 }
 0x1ae   : > { %v767_v11 = vsel %vm681_vm5, %v766_v40, 0.0 }
 0x1b1   : > { %v782_v18 = vpop.xlane.xlu0 %781 }
 0x1b8   : > { %v762_v20 = vpop.xlane.xlu1 %761 }
 0x1b9   : > { %v768_v17 = vadd.f32 %v767_v11, %v762_v20 }
 0x1bb   : > { %v769_v31 = vrot.slane %v768_v17, 4 }
 0x1bc   : > { %v785_v6 = vpop.xlane.xlu1 %784 }
 0x1bd   : > { %v770_v10 = vadd.f32 %v769_v31, %v768_v17  ;;  %v786_v62 = vadd.f32 %v785_v6, %v782_v18 }
 0x1bf   : > { %v771_v33 = vrot.slane %v770_v10, 2  ;;  %v787_v48 = vrot.slane %v786_v62, 4 }
 0x1c1   : > { %v772_v38 = vadd.f32 %v771_v33, %v770_v10  ;;  %v788_v54 = vadd.f32 %v787_v48, %v786_v62 }
 0x1c3   : > { %v773_v34 = vrot.slane %v772_v38, 1  ;;  %v789_v1 = vrot.slane %v788_v54, 2 }
 0x1c5   : > { %v790_v3 = vadd.f32 %v789_v1, %v788_v54  ;;  %v774_v46 = vadd.f32 %v773_v34, %v772_v38 }
 0x1c7   : > { %v791_v22 = vrot.slane %v790_v3, 1  ;;  %v797_v36 = vsel %vm796_vm0, %v774_v46, 0.0 }
 0x1c9   : > { %v792_v4 = vadd.f32 %v791_v22, %v790_v3 }
 0x1cb   : > { %v799_v30 = vsel %vm798_vm8, %v792_v4, 0.0 }
 0x1cc   : > { %v800_v37 = vadd.f32 %v799_v30, %v797_v36 }
 0x1ce   : > { %801 = vst [vmem:[%s178_s6] sm:$0xff] %v800_v37 }
 0x1cf   : > { %1033 = shalt.err (!%p1030_p3)
}
 0x1d0   : > { %s1034_s24 = scalar_lea.hbm %s814_s10, 128  ;;  %s1038_s27 = scalar_lea.hbm %s1507_s3, 256 }
 0x1d1   : > { %p1035_p4 = scmp.ne.s32.totalorder %s814_s10, %s1034_s24  ;;  %p1039_p9 = scmp.lt.s32.totalorder %s814_s10, %s1507_s3 }
 0x1d2   : > { %p1040_p10 = scmp.lt.s32.totalorder %s1038_s27, %s1034_s24 }
 0x1d3   : > { %p1036_p7 = pnand %p1035_p4, %p1141_p5 }
 0x1d4   : > { %p1041_p11 = por %p1040_p10, %p1039_p9 }
 0x1d5   : > { %p1037_p8 = pneg %p1036_p7 }
 0x1d7   : > { %p1042_p12 = pnand %p1041_p11, %p1037_p8 }
 0x1d9   : > { %1045 = shalt.err (!%p1042_p12)
}
 0x1da   : > { %977 = dma.vmem_to_hbm [thread:$0]  (%p1141_p5), %s817_s7, 128, %s814_s10, %s803_s11  }
 0x1db PF: > { %p983_p13 = scmp.ge.s32.totalorder %s1080_s15, 2  ;;  %s828_s30 = sand.u32 1, %s1068_s12  }
 0x1dc   : > { %s829_s4 = scalar_lea.sflag [#allocation3], %s828_s30 }
 0x1dd   : > { %p980_p0 = pnand %p983_p13, %p1145_p6 }
 0x1df   : > { %p981_p1 = pneg %p980_p0 }
 0x1e1   : > { %1063 = dma.done.wait (%p981_p1), %s829_s4, 128  }
 0x1e2   : > { %1065 = vsyncadd (%p981_p1), %s829_s4, 4294967168  ;;  %p13_p2 = scmp.ge.s32.totalorder %s1128_s18, 4   ;;  %s1522_s12 = smov %s1072_s13 }
 0x1e3   : > { %s1523_s13 = smov %s1076_s14  ;;  %s1524_s14 = smov %s1139_s21 }
 0x1e4   : > { %s1525_s15 = smov %s1128_s18  ;;  %15 = sbr.rel (!%p13_p2) target bundleno = 3 (0x3), region = 70 }
 0x1e9   :  { %834 = vsyncpa [#allocation3], 1 }
 0x1ea   :  { %836 = vsyncpa [#allocation3 + $0x1], 1 }

</bundles_post_ra>
